<compile_context>
chip_gen: v7x
topology: tpu7x:2x2x1
jax: 0.10.0
libtpu: 0.0.40
codegen_flags: <defaults>
</compile_context>

<pallas_src>
import functools

import jax
import jax.numpy as jnp
from jax.experimental import pallas as pl
from jax.experimental.pallas import tpu as pltpu

TRAIN_SIZE = (1, 3, 256, 256)   # module-level constant in the reference


# ---------------------------------------------------------------------------
# Kernels
# ---------------------------------------------------------------------------
def _compute_low(xb, a, bt, inv_k):
    """low = (A @ x @ B^T) * inv_k for a block of images.

    xb: (B, H, W) compute dtype, a: (HO, H), bt: (W, WO) 0/1 matrices.
    Returns (B, HO, WO) float32.
    """
    b, h, w = xb.shape
    wo = bt.shape[1]
    # Width-side matmul folded into one big MXU call: (B*H, W) @ (W, WO).
    t = jnp.dot(xb.reshape(b * h, w), bt, preferred_element_type=jnp.float32)
    t = t.reshape(b, h, wo).astype(a.dtype)   # cast back so 2nd matmul is not mixed-precision
    # Height-side matmul: unrolled over the small, static image-block dim.
    lows = [jnp.dot(a, t[i], preferred_element_type=jnp.float32) for i in range(b)]
    return jnp.stack(lows, axis=0) * inv_k    # (B, HO, WO) f32, scale applied in f32


def _pool_kernel(x_ref, a_ref, bt_ref, o_ref, *, inv_k):
    xb = x_ref[...].astype(a_ref.dtype)
    o_ref[...] = _compute_low(xb, a_ref[...], bt_ref[...], inv_k).astype(o_ref.dtype)


def _patch_mix_kernel(x_ref, a_ref, bt_ref, hh_ref, lm_ref, o_ref, *, inv_k):
    xb = x_ref[...]
    low = _compute_low(xb.astype(a_ref.dtype), a_ref[...], bt_ref[...], inv_k)
    out = xb.astype(jnp.float32) * hh_ref[...] + low * lm_ref[...]
    o_ref[...] = out.astype(o_ref.dtype)


def _patch_mix_global_kernel(x_ref, hh_ref, lm_ref, o_ref):
    # 'train' mode: AdaptiveAvgPool2d((1,1)) == global mean per image.
    xb = x_ref[...].astype(jnp.float32)
    low = jnp.mean(xb, axis=(1, 2), keepdims=True)
    out = xb * hh_ref[...] + low * lm_ref[...]
    o_ref[...] = out.astype(o_ref.dtype)


# ---------------------------------------------------------------------------
# Wrapper helpers
# ---------------------------------------------------------------------------
def _resolve_kernel_size(h, w, kernel_size, base_size):
    if kernel_size is None and base_size:
        if isinstance(base_size, int):
            base_size = (base_size, base_size)
        kernel_size = (h * base_size[0] // TRAIN_SIZE[-2],
                       w * base_size[1] // TRAIN_SIZE[-1])
    # Guard degenerate kernels for very small inputs (h*base//256 == 0).
    k1 = max(1, min(h, kernel_size[0]))
    k2 = max(1, min(w, kernel_size[1]))
    return k1, k2


def _pool_matrices(h, w, k1, k2, auto_pad, dtype):
    """0/1 row/col pooling(+replicate-pad) matrices A (HOxH) and B^T (WxWO)."""
    h_out = h - k1 + 1
    w_out = w - k2 + 1
    ih, iw = jnp.arange(h), jnp.arange(w)
    oh, ow = jnp.arange(h_out), jnp.arange(w_out)
    P_h = ((ih[None, :] >= oh[:, None]) & (ih[None, :] < oh[:, None] + k1)).astype(jnp.float32)
    P_w = ((iw[None, :] >= ow[:, None]) & (iw[None, :] < ow[:, None] + k2)).astype(jnp.float32)
    if auto_pad:
        pad_top = (h - h_out) // 2
        pad_left = (w - w_out) // 2
        src_h = jnp.clip(jnp.arange(h) - pad_top, 0, h_out - 1)
        src_w = jnp.clip(jnp.arange(w) - pad_left, 0, w_out - 1)
        R_h = (jnp.arange(h_out)[None, :] == src_h[:, None]).astype(jnp.float32)
        R_w = (jnp.arange(w_out)[None, :] == src_w[:, None]).astype(jnp.float32)
        A = R_h @ P_h            # (h, h)
        Bm = R_w @ P_w           # (w, w)
    else:
        A, Bm = P_h, P_w
    # Entries stay exactly 0/1 -> lossless in bf16 / low-precision compute dtypes.
    return A.astype(dtype), Bm.T.astype(dtype)


def _choose_block_batch(nc, h, w, itemsize, budget_bytes=16 * 2**20):
    """Images per grid step (amortize per-step overhead), VMEM-budget aware."""
    per_img = max(1, h * w * itemsize)
    b = int(max(1, min(8, budget_bytes // (4 * per_img), nc)))
    # Keep >= 2 grid steps so both v7x TensorCores get work on small batches.
    if nc > 1 and -(-nc // b) < 2:
        b = -(-nc // 2)
    return int(b)


def _vmem_limit_bytes(blk_in, blk_out, consts, inter):
    est = 2 * (blk_in + blk_out) + 2 * consts + inter + (2 << 20)
    return int(min(max(2 * est, 32 * 2**20), 64 * 2**20))


# ---------------------------------------------------------------------------
# Public wrappers
# ---------------------------------------------------------------------------
def avg_pool2d(x, kernel_size=None, base_size=None, auto_pad=True, fast_imp=False,
               compute_dtype=None):
    """Pallas version of AvgPool2d.forward (fast_imp=False path)."""
    # TODO(synk): fast_imp=True path (strided cumsum + nearest interpolate) not implemented.
    assert not fast_imp
    n, c, h, w = x.shape
    k1, k2 = _resolve_kernel_size(h, w, kernel_size, base_size)
    cdt = jnp.dtype(compute_dtype) if compute_dtype is not None else jnp.dtype(x.dtype)
    A, Bt = _pool_matrices(h, w, k1, k2, auto_pad, cdt)
    ho, wo = A.shape[0], Bt.shape[1]

    # Lane-dense output: if the output width is large but not 128-aligned,
    # pad B^T with zero columns and slice the result afterwards.
    wo_pad = wo
    if wo >= 128 and wo % 128 != 0:
        wo_pad = -(-wo // 128) * 128
        Bt = jnp.pad(Bt, ((0, 0), (0, wo_pad - wo)))

    nc = n * c
    x_item = jnp.dtype(x.dtype).itemsize
    B = _choose_block_batch(nc, h, w, x_item)
    nc_pad = -(-nc // B) * B
    xf = x.reshape(nc, h, w)
    if nc_pad != nc:
        xf = jnp.pad(xf, ((0, nc_pad - nc), (0, 0), (0, 0)))

    inv_k = 1.0 / float(k1 * k2)
    vmem_limit = _vmem_limit_bytes(
        blk_in=B * h * w * x_item,
        blk_out=B * ho * wo_pad * x_item,
        consts=(ho * h + w * wo_pad) * cdt.itemsize,
        inter=B * ho * (w + wo_pad) * 4,
    )

    out = pl.pallas_call(
        functools.partial(_pool_kernel, inv_k=inv_k),
        out_shape=jax.ShapeDtypeStruct((nc_pad, ho, wo_pad), x.dtype),
        grid=(nc_pad // B,),
        in_specs=[
            pl.BlockSpec((B, h, w), lambda i: (i, 0, 0)),
            pl.BlockSpec((ho, h), lambda i: (0, 0)),
            pl.BlockSpec((w, wo_pad), lambda i: (0, 0)),
        ],
        out_specs=pl.BlockSpec((B, ho, wo_pad), lambda i: (i, 0, 0)),
        compiler_params=pltpu.CompilerParams(
            dimension_semantics=("parallel",),
            vmem_limit_bytes=vmem_limit),
    )(xf, A, Bt)

    return out[:nc, :, :wo].reshape(n, c, ho, wo)


def patch_ap(x, h_param, l_param, mode, patch_size, compute_dtype=None):
    """Pallas version of Patch_ap.forward.

    mode = ('train', _)             -> AdaptiveAvgPool2d((1,1))
    mode = ('test', 'I_Haze'|'SOTS_Indoor') -> AvgPool2d(base_size=246)
    mode = ('test', 'O_Haze'|'SOTS_Outdoor')-> AvgPool2d(base_size=210)
    """
    n, c, H, W = x.shape
    p = patch_size
    assert H % p == 0 and W % p == 0
    w1, w2 = H // p, W // p
    channel = c * p * p

    # rearrange 'b c (p1 w1) (p2 w2) -> b (c p1 p2) w1 w2'
    px = (x.reshape(n, c, p, w1, p, w2)
           .transpose(0, 1, 2, 4, 3, 5)
           .reshape(n, channel, w1, w2))

    nc = n * channel
    x_item = jnp.dtype(x.dtype).itemsize
    B = _choose_block_batch(nc, w1, w2, x_item)
    nc_pad = -(-nc // B) * B

    xf = px.reshape(nc, w1, w2)
    hh = jnp.tile(h_param.astype(jnp.float32), n).reshape(nc, 1, 1)
    lm = jnp.tile((l_param - h_param).astype(jnp.float32), n).reshape(nc, 1, 1)
    if nc_pad != nc:
        pad = ((0, nc_pad - nc), (0, 0), (0, 0))
        xf = jnp.pad(xf, pad)
        hh = jnp.pad(hh, pad)
        lm = jnp.pad(lm, pad)

    grid = (nc_pad // B,)
    x_spec = pl.BlockSpec((B, w1, w2), lambda i: (i, 0, 0))
    s_spec = pl.BlockSpec((B, 1, 1), lambda i: (i, 0, 0))
    out_shape = jax.ShapeDtypeStruct((nc_pad, w1, w2), x.dtype)

    if mode[0] == 'train':
        vmem_limit = _vmem_limit_bytes(
            blk_in=B * w1 * w2 * x_item, blk_out=B * w1 * w2 * x_item,
            consts=8 * B, inter=2 * B * w1 * w2 * 4)
        out = pl.pallas_call(
            _patch_mix_global_kernel,
            out_shape=out_shape,
            grid=grid,
            in_specs=[x_spec, s_spec, s_spec],
            out_specs=x_spec,
            compiler_params=pltpu.CompilerParams(
                dimension_semantics=("parallel",),
                vmem_limit_bytes=vmem_limit),
        )(xf, hh, lm)
    else:
        base = 246 if mode[1] in ('I_Haze', 'SOTS_Indoor') else 210
        k1, k2 = _resolve_kernel_size(w1, w2, None, base)
        cdt = jnp.dtype(compute_dtype) if compute_dtype is not None else jnp.dtype(x.dtype)
        A, Bt = _pool_matrices(w1, w2, k1, k2, True, cdt)   # auto_pad=True -> (w1,w1),(w2,w2)
        inv_k = 1.0 / float(k1 * k2)
        vmem_limit = _vmem_limit_bytes(
            blk_in=B * w1 * w2 * x_item, blk_out=B * w1 * w2 * x_item,
            consts=(w1 * w1 + w2 * w2) * cdt.itemsize,
            inter=3 * B * w1 * w2 * 4)
        out = pl.pallas_call(
            functools.partial(_patch_mix_kernel, inv_k=inv_k),
            out_shape=out_shape,
            grid=grid,
            in_specs=[
                x_spec,
                pl.BlockSpec((w1, w1), lambda i: (0, 0)),
                pl.BlockSpec((w2, w2), lambda i: (0, 0)),
                s_spec,
                s_spec,
            ],
            out_specs=x_spec,
            compiler_params=pltpu.CompilerParams(
                dimension_semantics=("parallel",),
                vmem_limit_bytes=vmem_limit),
        )(xf, A, Bt, hh, lm)

    out = out[:nc].reshape(n, channel, w1, w2)
    # rearrange back 'b (c p1 p2) w1 w2 -> b c (p1 w1) (p2 w2)'
    return (out.reshape(n, c, p, p, w1, w2)
               .transpose(0, 1, 2, 4, 3, 5)
               .reshape(n, c, H, W))


# ---------------------------------------------------------------------------
# Plain-JAX references (for checking)
# ---------------------------------------------------------------------------
def ref_avg_pool2d(x, kernel_size=None, base_size=None, auto_pad=True):
    n, c, h, w = x.shape
    k1, k2 = _resolve_kernel_size(h, w, kernel_size, base_size)
    s = jnp.cumsum(jnp.cumsum(x, axis=-1), axis=-2)
    s = jnp.pad(s, ((0, 0), (0, 0), (1, 0), (1, 0)))
    s1 = s[:, :, :-k1, :-k2]
    s2 = s[:, :, :-k1, k2:]
    s3 = s[:, :, k1:, :-k2]
    s4 = s[:, :, k1:, k2:]
    out = (s4 + s1 - s2 - s3) / (k1 * k2)
    if auto_pad:
        _h, _w = out.shape[2:]
        out = jnp.pad(out, ((0, 0), (0, 0),
                            ((h - _h) // 2, (h - _h + 1) // 2),
                            ((w - _w) // 2, (w - _w + 1) // 2)), mode="edge")
    return out


def ref_patch_ap(x, h_param, l_param, mode, patch_size):
    n, c, H, W = x.shape
    p = patch_size
    w1, w2 = H // p, W // p
    channel = c * p * p
    px = (x.reshape(n, c, p, w1, p, w2).transpose(0, 1, 2, 4, 3, 5)
           .reshape(n, channel, w1, w2))
    if mode[0] == 'train':
        low = jnp.mean(px, axis=(-2, -1), keepdims=True)
    else:
        base = 246 if mode[1] in ('I_Haze', 'SOTS_Indoor') else 210
        low = ref_avg_pool2d(px, base_size=base, auto_pad=True)
    high = (px - low) * h_param[None, :, None, None]
    out = high + low * l_param[None, :, None, None]
    return (out.reshape(n, c, p, p, w1, w2).transpose(0, 1, 2, 4, 3, 5)
               .reshape(n, c, H, W))


# ---------------------------------------------------------------------------
if __name__ == "__main__":
    key = jax.random.PRNGKey(0)
    kx, kh, kl = jax.random.split(key, 3)

    inchannel, patch_size = 4, 2
    channel = inchannel * patch_size ** 2
    x = jax.random.normal(kx, (2, inchannel, 16, 16), dtype=jnp.float32)
    h_param = 0.1 * jax.random.normal(kh, (channel,), dtype=jnp.float32)
    l_param = 0.1 * jax.random.normal(kl, (channel,), dtype=jnp.float32)

    # Patch_ap, test mode (AvgPool2d(base_size=246) path), fused mix.
    mode = ('test', 'I_Haze')
    out = jax.block_until_ready(patch_ap(x, h_param, l_param, mode, patch_size))
    ref = ref_patch_ap(x, h_param, l_param, mode, patch_size)
    assert out.shape == x.shape, (out.shape, x.shape)
    assert jnp.allclose(out, ref, atol=1e-4, rtol=1e-4), float(jnp.max(jnp.abs(out - ref)))

    # Patch_ap, train mode (AdaptiveAvgPool2d((1,1)) path).
    mode = ('train', None)
    out_t = jax.block_until_ready(patch_ap(x, h_param, l_param, mode, patch_size))
    ref_t = ref_patch_ap(x, h_param, l_param, mode, patch_size)
    assert jnp.allclose(out_t, ref_t, atol=1e-4, rtol=1e-4), float(jnp.max(jnp.abs(out_t - ref_t)))

    # Standalone AvgPool2d, auto_pad=True and auto_pad=False.
    out_p = jax.block_until_ready(avg_pool2d(x, base_size=64, auto_pad=True))
    ref_p = ref_avg_pool2d(x, base_size=64, auto_pad=True)
    assert out_p.shape == x.shape
    assert jnp.allclose(out_p, ref_p, atol=1e-4, rtol=1e-4), float(jnp.max(jnp.abs(out_p - ref_p)))

    out_v = jax.block_until_ready(avg_pool2d(x, base_size=64, auto_pad=False))
    ref_v = ref_avg_pool2d(x, base_size=64, auto_pad=False)
    assert out_v.shape == ref_v.shape, (out_v.shape, ref_v.shape)
    assert jnp.allclose(out_v, ref_v, atol=1e-4, rtol=1e-4), float(jnp.max(jnp.abs(out_v - ref_v)))

    print("KERNEL_OK")
</pallas_src>

<mosaic_0001>
module attributes {stable_mosaic.version = 11 : i64} {
  func.func @_patch_mix_kernel(%arg0: i32, %arg1: memref<8x8x8xf32, #tpu.memory_space<vmem>>, %arg2: memref<8x8xf32, #tpu.memory_space<vmem>>, %arg3: memref<8x8xf32, #tpu.memory_space<vmem>>, %arg4: memref<8x1x1xf32, #tpu.memory_space<vmem>>, %arg5: memref<8x1x1xf32, #tpu.memory_space<vmem>>, %arg6: memref<8x8x8xf32, #tpu.memory_space<vmem>>) attributes {dimension_semantics = [#tpu.dimension_semantics<parallel>], iteration_bounds = array<i64: 4>, scalar_prefetch = 0 : i64, scratch_operands = 0 : i64, tpu.core_type = #tpu.core_type<tc>, window_params = [{transform_indices = @transform_0, window_bounds = array<i64: 8, 8, 8>}, {pipeline_mode = #tpu.pipeline_mode<synchronous>, transform_indices = @transform_1, window_bounds = array<i64: 8, 8>}, {pipeline_mode = #tpu.pipeline_mode<synchronous>, transform_indices = @transform_2, window_bounds = array<i64: 8, 8>}, {transform_indices = @transform_3, window_bounds = array<i64: 8, 1, 1>}, {transform_indices = @transform_4, window_bounds = array<i64: 8, 1, 1>}, {transform_indices = @transform_5, window_bounds = array<i64: 8, 8, 8>}]} {
    %c0 = arith.constant 0 : index
    %c0_0 = arith.constant 0 : index
    %c0_1 = arith.constant 0 : index
    %0 = vector.load %arg1[%c0, %c0_0, %c0_1] : memref<8x8x8xf32, #tpu.memory_space<vmem>>, vector<8x8x8xf32>
    %c0_2 = arith.constant 0 : index
    %c0_3 = arith.constant 0 : index
    %1 = vector.load %arg2[%c0_2, %c0_3] : memref<8x8xf32, #tpu.memory_space<vmem>>, vector<8x8xf32>
    %c0_4 = arith.constant 0 : index
    %c0_5 = arith.constant 0 : index
    %2 = vector.load %arg3[%c0_4, %c0_5] : memref<8x8xf32, #tpu.memory_space<vmem>>, vector<8x8xf32>
    %3 = vector.shape_cast %0 : vector<8x8x8xf32> to vector<64x8xf32>
    %cst = arith.constant dense<0.000000e+00> : vector<64x8xf32>
    %4 = tpu.matmul %3, %2, %cst {dimension_numbers = #tpu.dot_dimension_numbers<[1], [0], [0], [1], [0, 0, 1, 1], [], []>} : vector<64x8xf32>, vector<8x8xf32>, vector<64x8xf32> -> vector<64x8xf32>
    %5 = vector.shape_cast %4 : vector<64x8xf32> to vector<8x8x8xf32>
    %6 = vector.extract_strided_slice %5 {offsets = [0, 0, 0], sizes = [1, 8, 8], strides = [1, 1, 1]} : vector<8x8x8xf32> to vector<1x8x8xf32>
    %7 = vector.shape_cast %6 : vector<1x8x8xf32> to vector<8x8xf32>
    %cst_6 = arith.constant dense<0.000000e+00> : vector<8x8xf32>
    %8 = tpu.matmul %1, %7, %cst_6 {dimension_numbers = #tpu.dot_dimension_numbers<[1], [0], [0], [1], [0, 0, 1, 1], [], []>} : vector<8x8xf32>, vector<8x8xf32>, vector<8x8xf32> -> vector<8x8xf32>
    %9 = vector.extract_strided_slice %5 {offsets = [1, 0, 0], sizes = [1, 8, 8], strides = [1, 1, 1]} : vector<8x8x8xf32> to vector<1x8x8xf32>
    %10 = vector.shape_cast %9 : vector<1x8x8xf32> to vector<8x8xf32>
    %cst_7 = arith.constant dense<0.000000e+00> : vector<8x8xf32>
    %11 = tpu.matmul %1, %10, %cst_7 {dimension_numbers = #tpu.dot_dimension_numbers<[1], [0], [0], [1], [0, 0, 1, 1], [], []>} : vector<8x8xf32>, vector<8x8xf32>, vector<8x8xf32> -> vector<8x8xf32>
    %12 = vector.extract_strided_slice %5 {offsets = [2, 0, 0], sizes = [1, 8, 8], strides = [1, 1, 1]} : vector<8x8x8xf32> to vector<1x8x8xf32>
    %13 = vector.shape_cast %12 : vector<1x8x8xf32> to vector<8x8xf32>
    %cst_8 = arith.constant dense<0.000000e+00> : vector<8x8xf32>
    %14 = tpu.matmul %1, %13, %cst_8 {dimension_numbers = #tpu.dot_dimension_numbers<[1], [0], [0], [1], [0, 0, 1, 1], [], []>} : vector<8x8xf32>, vector<8x8xf32>, vector<8x8xf32> -> vector<8x8xf32>
    %15 = vector.extract_strided_slice %5 {offsets = [3, 0, 0], sizes = [1, 8, 8], strides = [1, 1, 1]} : vector<8x8x8xf32> to vector<1x8x8xf32>
    %16 = vector.shape_cast %15 : vector<1x8x8xf32> to vector<8x8xf32>
    %cst_9 = arith.constant dense<0.000000e+00> : vector<8x8xf32>
    %17 = tpu.matmul %1, %16, %cst_9 {dimension_numbers = #tpu.dot_dimension_numbers<[1], [0], [0], [1], [0, 0, 1, 1], [], []>} : vector<8x8xf32>, vector<8x8xf32>, vector<8x8xf32> -> vector<8x8xf32>
    %18 = vector.extract_strided_slice %5 {offsets = [4, 0, 0], sizes = [1, 8, 8], strides = [1, 1, 1]} : vector<8x8x8xf32> to vector<1x8x8xf32>
    %19 = vector.shape_cast %18 : vector<1x8x8xf32> to vector<8x8xf32>
    %cst_10 = arith.constant dense<0.000000e+00> : vector<8x8xf32>
    %20 = tpu.matmul %1, %19, %cst_10 {dimension_numbers = #tpu.dot_dimension_numbers<[1], [0], [0], [1], [0, 0, 1, 1], [], []>} : vector<8x8xf32>, vector<8x8xf32>, vector<8x8xf32> -> vector<8x8xf32>
    %21 = vector.extract_strided_slice %5 {offsets = [5, 0, 0], sizes = [1, 8, 8], strides = [1, 1, 1]} : vector<8x8x8xf32> to vector<1x8x8xf32>
    %22 = vector.shape_cast %21 : vector<1x8x8xf32> to vector<8x8xf32>
    %cst_11 = arith.constant dense<0.000000e+00> : vector<8x8xf32>
    %23 = tpu.matmul %1, %22, %cst_11 {dimension_numbers = #tpu.dot_dimension_numbers<[1], [0], [0], [1], [0, 0, 1, 1], [], []>} : vector<8x8xf32>, vector<8x8xf32>, vector<8x8xf32> -> vector<8x8xf32>
    %24 = vector.extract_strided_slice %5 {offsets = [6, 0, 0], sizes = [1, 8, 8], strides = [1, 1, 1]} : vector<8x8x8xf32> to vector<1x8x8xf32>
    %25 = vector.shape_cast %24 : vector<1x8x8xf32> to vector<8x8xf32>
    %cst_12 = arith.constant dense<0.000000e+00> : vector<8x8xf32>
    %26 = tpu.matmul %1, %25, %cst_12 {dimension_numbers = #tpu.dot_dimension_numbers<[1], [0], [0], [1], [0, 0, 1, 1], [], []>} : vector<8x8xf32>, vector<8x8xf32>, vector<8x8xf32> -> vector<8x8xf32>
    %27 = vector.extract_strided_slice %5 {offsets = [7, 0, 0], sizes = [1, 8, 8], strides = [1, 1, 1]} : vector<8x8x8xf32> to vector<1x8x8xf32>
    %28 = vector.shape_cast %27 : vector<1x8x8xf32> to vector<8x8xf32>
    %cst_13 = arith.constant dense<0.000000e+00> : vector<8x8xf32>
    %29 = tpu.matmul %1, %28, %cst_13 {dimension_numbers = #tpu.dot_dimension_numbers<[1], [0], [0], [1], [0, 0, 1, 1], [], []>} : vector<8x8xf32>, vector<8x8xf32>, vector<8x8xf32> -> vector<8x8xf32>
    %30 = vector.shape_cast %8 : vector<8x8xf32> to vector<1x8x8xf32>
    %31 = vector.shape_cast %11 : vector<8x8xf32> to vector<1x8x8xf32>
    %32 = vector.shape_cast %14 : vector<8x8xf32> to vector<1x8x8xf32>
    %33 = vector.shape_cast %17 : vector<8x8xf32> to vector<1x8x8xf32>
    %34 = vector.shape_cast %20 : vector<8x8xf32> to vector<1x8x8xf32>
    %35 = vector.shape_cast %23 : vector<8x8xf32> to vector<1x8x8xf32>
    %36 = vector.shape_cast %26 : vector<8x8xf32> to vector<1x8x8xf32>
    %37 = vector.shape_cast %29 : vector<8x8xf32> to vector<1x8x8xf32>
    %38 = tpu.concatenate %30, %31, %32, %33, %34, %35, %36, %37 in 0 : vector<1x8x8xf32>, vector<1x8x8xf32>, vector<1x8x8xf32>, vector<1x8x8xf32>, vector<1x8x8xf32>, vector<1x8x8xf32>, vector<1x8x8xf32>, vector<1x8x8xf32> -> vector<8x8x8xf32>
    %cst_14 = arith.constant 0.0204081628 : f32
    %39 = vector.broadcast %cst_14 : f32 to vector<8x8x8xf32>
    %40 = arith.mulf %38, %39 : vector<8x8x8xf32>
    %c0_15 = arith.constant 0 : index
    %c0_16 = arith.constant 0 : index
    %c0_17 = arith.constant 0 : index
    %41 = vector.load %arg4[%c0_15, %c0_16, %c0_17] : memref<8x1x1xf32, #tpu.memory_space<vmem>>, vector<8x1x1xf32>
    %42 = vector.broadcast %41 : vector<8x1x1xf32> to vector<8x8x8xf32>
    %43 = arith.mulf %0, %42 : vector<8x8x8xf32>
    %c0_18 = arith.constant 0 : index
    %c0_19 = arith.constant 0 : index
    %c0_20 = arith.constant 0 : index
    %44 = vector.load %arg5[%c0_18, %c0_19, %c0_20] : memref<8x1x1xf32, #tpu.memory_space<vmem>>, vector<8x1x1xf32>
    %45 = vector.broadcast %44 : vector<8x1x1xf32> to vector<8x8x8xf32>
    %46 = arith.mulf %40, %45 : vector<8x8x8xf32>
    %47 = arith.addf %43, %46 : vector<8x8x8xf32>
    %c0_21 = arith.constant 0 : index
    %c0_22 = arith.constant 0 : index
    %c0_23 = arith.constant 0 : index
    %48 = vector.load %arg6[%c0_21, %c0_22, %c0_23] : memref<8x8x8xf32, #tpu.memory_space<vmem>>, vector<8x8x8xf32>
    tpu.vector_store %arg6[%c0_21, %c0_22, %c0_23], %47 {strides = array<i32>} : memref<8x8x8xf32, #tpu.memory_space<vmem>>, vector<8x8x8xf32>,
    return
  }
  func.func @transform_0(%arg0: i32) -> (i32, i32, i32) {
    %c0_i32 = arith.constant 0 : i32
    %c0_i32_0 = arith.constant 0 : i32
    %c0_i32_1 = arith.constant 0 : i32
    return %arg0, %c0_i32, %c0_i32_0 : i32, i32, i32
  }
  func.func @transform_1(%arg0: i32) -> (i32, i32) {
    %c0_i32 = arith.constant 0 : i32
    %c0_i32_0 = arith.constant 0 : i32
    %c0_i32_1 = arith.constant 0 : i32
    return %c0_i32, %c0_i32_0 : i32, i32
  }
  func.func @transform_2(%arg0: i32) -> (i32, i32) {
    %c0_i32 = arith.constant 0 : i32
    %c0_i32_0 = arith.constant 0 : i32
    %c0_i32_1 = arith.constant 0 : i32
    return %c0_i32, %c0_i32_0 : i32, i32
  }
  func.func @transform_3(%arg0: i32) -> (i32, i32, i32) {
    %c0_i32 = arith.constant 0 : i32
    %c0_i32_0 = arith.constant 0 : i32
    %c0_i32_1 = arith.constant 0 : i32
    return %arg0, %c0_i32, %c0_i32_0 : i32, i32, i32
  }
  func.func @transform_4(%arg0: i32) -> (i32, i32, i32) {
    %c0_i32 = arith.constant 0 : i32
    %c0_i32_0 = arith.constant 0 : i32
    %c0_i32_1 = arith.constant 0 : i32
    return %arg0, %c0_i32, %c0_i32_0 : i32, i32, i32
  }
  func.func @transform_5(%arg0: i32) -> (i32, i32, i32) {
    %c0_i32 = arith.constant 0 : i32
    %c0_i32_0 = arith.constant 0 : i32
    %c0_i32_1 = arith.constant 0 : i32
    return %arg0, %c0_i32, %c0_i32_0 : i32, i32, i32
  }
}

</mosaic_0001>

<bundles_post_ra>
// kernel: tpu_custom_call.1
= control target key start
LH: loop header
LB: loop body
LE: loop exit
PB: predicated region body
PF: predicated region fallthrough
CT: control target
= control target key end

     0   :  { %s1421_s18 = smov 0   ;;  %s1549_s0 = inlined_call_operand.vmem [shape: f32[32,8,8], index: 0, kind: input, shape index: {}]   ;;  %s1550_s1 = inlined_call_operand.vmem [shape: f32[8,8], index: 1, kind: input, shape index: {}]   ;;  %s1551_s2 = inlined_call_operand.vmem [shape: f32[8,8], index: 2, kind: input, shape index: {}]   ;;  %s1552_s3 = inlined_call_operand.vmem [shape: f32[32,1,1], index: 3, kind: input, shape index: {}]   ;;  %s1553_s4 = inlined_call_operand.vmem [shape: f32[32,1,1], index: 4, kind: input, shape index: {}]   ;;  %s1554_s5 = inlined_call_operand.vmem [shape: f32[32,8,8], index: 5, kind: output, shape index: {}]  }
   0x1 LB: > { %s1243_s19 = sadd.s32 4294967295, %s1386_s18   ;;  %p1247_p0 = scmp.ge.s32.totalorder %s1386_s18, 1  ;;  %s1386_s18 = sphi %s1421_s18, %s15_s18  }
   0x2   : > { %p208_p1 = scmp.lt.s32.totalorder %s1386_s18, 5 }
   0x4   : > { %p209_p2 = pnand %p1247_p0, %p208_p1 }
   0x5   : > { %v275_v0 = vld [vmem:[%s1551_s2] sm:$0xff] (!%p209_p2)  ;;  %s1248_s22 = sshll.u32 (!%p209_p2), %s1243_s19, 3  ;;  %vm276_vm0 = vcmask (!%p209_p2), 64512   ;;  %v1388_v9 = vmov (!%p209_p2), 0.0   ;;  %vm1389_vm1 = vmmov (!%p209_p2), 0   ;;  %v1390_v10 = vmov (!%p209_p2), 0  }
   0x6   : > { %212 = sbr.rel (%p209_p2) target bundleno = 471 (0x1d7), region = 40  ;;  %1313 = vmatprep.subr.mxu0 (!%p209_p2), %v275_v0  ;;  %p245_p3 = scmp.lt.s32.totalorder (!%p209_p2), %s1248_s22, 31  ;;  %1327 = vmatprep.subr.mxu1 (!%p209_p2), %v1388_v9  ;;  %v274_v28 = vld [vmem:[%s1550_s1] sm:$0xff] (!%p209_p2) }
   0x7   : > { %1314 = vmatpush3.msra.mxu0 (!%p209_p2), %v275_v0  ;;  %1329 = vmatprep.mubr.msk.f32.mxu1 (!%p209_p2), %vm1389_vm1, %v1388_v9 }
   0x8   : > { %1347 = vmatprep.subr.mxu0 (!%p209_p2), %v1388_v9  ;;  %1379 = vset.pattern.permute.xlu1 (!%p209_p2), %v1390_v10 }
   0x9   : > { %1378 = vset.pattern.permute.xlu0 (!%p209_p2), %v1390_v10 }
   0xd   : > { %s1556_s22 = smov (!%p245_p3, %s1248_s22), 31 }
   0xe   : > { %s1249_s23 = sshll.u32 %s1556_s22, 3  ;;  %s253_s29 = scalar_lea.vmem %s1552_s3, %s1556_s22 }
   0xf   : > { %s248_s26 = scalar_lea.vmem %s1549_s0, %s1249_s23  ;;  %v1272_v11 = vld [vmem:[%s253_s29 + $0x2] ss:$0 sm:$0xff]  ;;  %v1270_v12 = vld [vmem:[%s253_s29] ss:$0 sm:$0xff]  ;;  %v1273_v13 = vld [vmem:[%s253_s29 + $0x3] ss:$0 sm:$0xff]  ;;  %s258_s7 = scalar_lea.vmem %s1553_s4, %s1556_s22 }
  0x10   : > { %v1440_v1 = vld [vmem:[%s248_s26] sm:$0xff]  ;;  %v1442_v2 = vld [vmem:[%s248_s26 + $0x8] sm:$0xff]  ;;  %v1444_v3 = vld [vmem:[%s248_s26 + $0x10] sm:$0xff]  ;;  %1034 = vperm.xlu1 %1379, %v1272_v11   ;;  %1026 = vperm.xlu0 %1378, %v1270_v12   ;;  %s1521_s12 = scalar_lea.vmem %s1554_s5, %s1249_s23 }
  0x11   : > { %1315 = vmatprep.mubr.msk.f32.mxu0 %vm276_vm0, %v1440_v1  ;;  %v1452_v4 = vld [vmem:[%s248_s26 + $0x18] sm:$0xff]  ;;  %v1454_v5 = vld [vmem:[%s248_s26 + $0x20] sm:$0xff]  ;;  %v1460_v6 = vld [vmem:[%s248_s26 + $0x28] sm:$0xff] }
  0x12   : > { %1316 = vmatmul.mubr.msk.f32.vlgmr.msra.gmra.mrb[0].mxu0 %vm276_vm0, %v1442_v2  ;;  %v1462_v7 = vld [vmem:[%s248_s26 + $0x30] sm:$0xff]  ;;  %v1468_v8 = vld [vmem:[%s248_s26 + $0x38] sm:$0xff]  ;;  %v1271_v14 = vld [vmem:[%s253_s29 + $0x1] ss:$0 sm:$0xff] }
  0x13   : > { %1318 = vmatprep.mubr.msk.f32.mxu0 %vm276_vm0, %v1444_v3  ;;  %v1275_v15 = vld [vmem:[%s253_s29 + $0x5] ss:$0 sm:$0xff]  ;;  %v1274_v16 = vld [vmem:[%s253_s29 + $0x4] ss:$0 sm:$0xff]  ;;  %v1277_v17 = vld [vmem:[%s253_s29 + $0x7] ss:$0 sm:$0xff] }
  0x14   : > { %1038 = vperm.xlu1 %1379, %v1273_v13   ;;  %1030 = vperm.xlu0 %1378, %v1271_v14   ;;  %v1276_v18 = vld [vmem:[%s253_s29 + $0x6] ss:$0 sm:$0xff]  ;;  %v1279_v19 = vld [vmem:[%s258_s7 + $0x1] ss:$0 sm:$0xff]  ;;  %v1278_v20 = vld [vmem:[%s258_s7] ss:$0 sm:$0xff] }
  0x15   : > { %v1281_v21 = vld [vmem:[%s258_s7 + $0x3] ss:$0 sm:$0xff]  ;;  %v1280_v22 = vld [vmem:[%s258_s7 + $0x2] ss:$0 sm:$0xff]  ;;  %v1283_v23 = vld [vmem:[%s258_s7 + $0x5] ss:$0 sm:$0xff] }
  0x16   : > { %1319 = vmatmul.mubr.msk.f32.gmra.mrb[2].mxu0 %vm276_vm0, %v1452_v4  ;;  %v1282_v24 = vld [vmem:[%s258_s7 + $0x4] ss:$0 sm:$0xff]  ;;  %v1285_v25 = vld [vmem:[%s258_s7 + $0x7] ss:$0 sm:$0xff]  ;;  %v1284_v26 = vld [vmem:[%s258_s7 + $0x6] ss:$0 sm:$0xff] }
  0x17   : > { %1321 = vmatprep.mubr.msk.f32.mxu0 %vm276_vm0, %v1454_v5 }
  0x18   : > { %1046 = vperm.xlu1 %1379, %v1275_v15   ;;  %1042 = vperm.xlu0 %1378, %v1274_v16  }
  0x1a   : > { %1322 = vmatmul.mubr.msk.f32.gmra.mrb[4].mxu0 %vm276_vm0, %v1460_v6 }
  0x1b   : > { %1324 = vmatprep.mubr.msk.f32.mxu0 %vm276_vm0, %v1462_v7 }
  0x1c   : > { %1054 = vperm.xlu1 %1379, %v1277_v17   ;;  %1050 = vperm.xlu0 %1378, %v1276_v18  }
  0x1e   : > { %1325 = vmatmul.mubr.msk.f32.gmra.mrb[6].mxu0 %vm276_vm0, %v1468_v8 }
  0x1f   : > { %1349 = vmatprep.mubr.msk.f32.mxu0 %vm1389_vm1, %v1388_v9 }
  0x20   : > { %1118 = vperm.xlu1 %1379, %v1279_v19   ;;  %1114 = vperm.xlu0 %1378, %v1278_v20  }
  0x24   : > { %1126 = vperm.xlu1 %1379, %v1281_v21   ;;  %1122 = vperm.xlu0 %1378, %v1280_v22  }
  0x28   : > { %1134 = vperm.xlu1 %1379, %v1283_v23   ;;  %1130 = vperm.xlu0 %1378, %v1282_v24  }
  0x2c   : > { %1142 = vperm.xlu1 %1379, %v1285_v25   ;;  %1138 = vperm.xlu0 %1378, %v1284_v26  }
  0x8f   : > { %v1027_v36 = vpop.permute.xlu0 %1026  ;;  %v1035_v38 = vpop.permute.xlu1 %1034 }
  0x90   : > { %v1057_v49 = vmul.f32 %v1027_v36, %v1440_v1  ;;  %v1059_v10 = vmul.f32 %v1035_v38, %v1444_v3 }
  0x93   : > { %v1031_v37 = vpop.permute.xlu0 %1030  ;;  %v1039_v40 = vpop.permute.xlu1 %1038 }
  0x94   : > { %v1058_v56 = vmul.f32 %v1031_v37, %v1442_v2  ;;  %v1060_v3 = vmul.f32 %v1039_v40, %v1452_v4 }
  0x97   : > { %v1043_v39 = vpop.permute.xlu0 %1042  ;;  %v1047_v42 = vpop.permute.xlu1 %1046 }
  0x98   : > { %v1061_v11 = vmul.f32 %v1043_v39, %v1454_v5 }
  0x9b   : > { %v1051_v41 = vpop.permute.xlu0 %1050  ;;  %v1055_v44 = vpop.permute.xlu1 %1054 }
  0x9c   : > { %v1063_v5 = vmul.f32 %v1051_v41, %v1462_v7 }
  0x9f   : > { %v1115_v43 = vpop.permute.xlu0 %1114  ;;  %v1119_v51 = vpop.permute.xlu1 %1118 }
  0xa3   : > { %v1123_v46 = vpop.permute.xlu0 %1122 }
  0xa7   : > { %v1131_v57 = vpop.permute.xlu0 %1130 }
  0xab   : > { %v1139_v21 = vpop.permute.xlu0 %1138 }
  0xe5   : > { %v1317_v27 = vpop.f32.mrb[0].mxu0 }
  0xe6   : > { %v367_v29 = vpop.f32.mrb[1].mxu0 }
  0xe7   : > { %1328 = vmatpush3.msra.mxu1 %v367_v29 }
  0xe8   : > { %1330 = vmatmul.mubr.msk.f32.vlgmr.msra.gmra.mrb[0].mxu1 %vm276_vm0, %v274_v28  ;;  %1332 = vmatprep.subr.mxu1 %v1388_v9 }
  0xe9   : > { %v1320_v30 = vpop.f32.mrb[2].mxu0  ;;  %1333 = vmatpush3.msra.mxu1 %v1317_v27  ;;  %1334 = vmatprep.mubr.msk.f32.mxu1 %vm1389_vm1, %v1388_v9 }
  0xea   : > { %v377_v31 = vpop.f32.mrb[3].mxu0  ;;  %1337 = vmatprep.subr.mxu1 %v1388_v9 }
  0xec   : > { %1335 = vmatmul.mubr.msk.f32.vlgmr.msra.gmra.mrb[2].mxu1 %vm276_vm0, %v274_v28 }
  0xed   : > { %1338 = vmatpush3.msra.mxu1 %v377_v31  ;;  %v1323_v32 = vpop.f32.mrb[4].mxu0  ;;  %1339 = vmatprep.mubr.msk.f32.mxu1 %vm1389_vm1, %v1388_v9 }
  0xee   : > { %v387_v33 = vpop.f32.mrb[5].mxu0  ;;  %1342 = vmatprep.subr.mxu1 %v1388_v9 }
  0xef   : > { %1348 = vmatpush3.msra.mxu0 %v387_v33 }
  0xf0   : > { %1340 = vmatmul.mubr.msk.f32.vlgmr.msra.gmra.mrb[4].mxu1 %vm276_vm0, %v274_v28  ;;  %1350 = vmatmul.mubr.msk.f32.vlgmr.msra.gmra.mrb[8].mxu0 %vm276_vm0, %v274_v28 }
  0xf1   : > { %1343 = vmatpush3.msra.mxu1 %v1320_v30  ;;  %v1326_v34 = vpop.f32.mrb[6].mxu0  ;;  %1357 = vmatprep.subr.mxu0 %v1388_v9  ;;  %v1062_v30 = vmul.f32 %v1047_v42, %v1460_v6 }
  0xf2   : > { %v397_v35 = vpop.f32.mrb[7].mxu0  ;;  %1344 = vmatprep.mubr.msk.f32.mxu1 %vm1389_vm1, %v1388_v9  ;;  %1352 = vmatprep.subr.mxu1 %v1388_v9 }
  0xf3   : > { %1358 = vmatpush3.msra.mxu0 %v397_v35  ;;  %1359 = vmatprep.mubr.msk.f32.mxu0 %vm1389_vm1, %v1388_v9  ;;  %v1064_v35 = vmul.f32 %v1055_v44, %v1468_v8 }
  0xf4   : > { %1345 = vmatmul.mubr.msk.f32.vlgmr.msra.gmra.mrb[6].mxu1 %vm276_vm0, %v274_v28  ;;  %1360 = vmatmul.mubr.msk.f32.vlgmr.msra.gmra.mrb[10].mxu0 %vm276_vm0, %v274_v28 }
  0xf5   : > { %1353 = vmatpush3.msra.mxu1 %v1323_v32  ;;  %1354 = vmatprep.mubr.msk.f32.mxu1 %vm1389_vm1, %v1388_v9 }
  0xf6   : > { %1362 = vmatprep.subr.mxu1 %v1388_v9 }
  0xf8   : > { %1355 = vmatmul.mubr.msk.f32.vlgmr.msra.gmra.mrb[8].mxu1 %vm276_vm0, %v274_v28 }
  0xf9   : > { %1363 = vmatpush3.msra.mxu1 %v1326_v34  ;;  %1364 = vmatprep.mubr.msk.f32.mxu1 %vm1389_vm1, %v1388_v9  ;;  %v1127_v9 = vpop.permute.xlu1 %1126 }
  0xfc   : > { %1365 = vmatmul.mubr.msk.f32.vlgmr.msra.gmra.mrb[10].mxu1 %vm276_vm0, %v274_v28 }
  0xfd   : > { %v1135_v24 = vpop.permute.xlu1 %1134 }
 0x101   : > { %v1143_v34 = vpop.permute.xlu1 %1142 }
 0x1bb   : > { %v475_v45 = vpop.f32.mrb[0].mxu1 }
 0x1bc   : > { %v969_v47 = vmul.f32 0.020408163, %v475_v45  ;;  %v1331_v48 = vpop.f32.mrb[1].mxu1 }
 0x1be   : > { %v1145_v50 = vmul.f32 %v1115_v43, %v969_v47 }
 0x1bf   : > { %v545_v52 = vpop.f32.mrb[2].mxu1 }
 0x1c0   : > { %v1153_v53 = vadd.f32 %v1145_v50, %v1057_v49  ;;  %v970_v54 = vmul.f32 0.020408163, %v545_v52  ;;  %v1336_v55 = vpop.f32.mrb[3].mxu1 }
 0x1c2   : > { %1161 = vst.msk [vmem:[%s1521_s12] sm:$0xff] %vm276_vm0, %v1153_v53  ;;  %v1146_v58 = vmul.f32 %v1119_v51, %v970_v54 }
 0x1c3   : > { %v615_v59 = vpop.f32.mrb[4].mxu1  ;;  %v755_v60 = vpop.f32.mrb[8].mxu0 }
 0x1c4   : > { %v1154_v61 = vadd.f32 %v1146_v58, %v1058_v56  ;;  %v971_v62 = vmul.f32 0.020408163, %v615_v59  ;;  %v973_v63 = vmul.f32 0.020408163, %v755_v60  ;;  %v1341_v0 = vpop.f32.mrb[5].mxu1  ;;  %v1351_v1 = vpop.f32.mrb[9].mxu0 }
 0x1c6   : > { %1162 = vst.msk [vmem:[%s1521_s12 + $0x8] sm:$0xff] %vm276_vm0, %v1154_v61  ;;  %v1147_v2 = vmul.f32 %v1123_v46, %v971_v62  ;;  %v1149_v12 = vmul.f32 %v1131_v57, %v973_v63 }
 0x1c7   : > { %v685_v13 = vpop.f32.mrb[6].mxu1  ;;  %v895_v14 = vpop.f32.mrb[10].mxu0 }
 0x1c8   : > { %v1155_v15 = vadd.f32 %v1147_v2, %v1059_v10  ;;  %v1157_v16 = vadd.f32 %v1149_v12, %v1061_v11  ;;  %v972_v17 = vmul.f32 0.020408163, %v685_v13  ;;  %v975_v18 = vmul.f32 0.020408163, %v895_v14  ;;  %v1346_v19 = vpop.f32.mrb[7].mxu1  ;;  %v1361_v20 = vpop.f32.mrb[11].mxu0 }
 0x1ca   : > { %1163 = vst.msk [vmem:[%s1521_s12 + $0x10] sm:$0xff] %vm276_vm0, %v1155_v15  ;;  %1165 = vst.msk [vmem:[%s1521_s12 + $0x20] sm:$0xff] %vm276_vm0, %v1157_v16  ;;  %v1148_v22 = vmul.f32 %v1127_v9, %v972_v17  ;;  %v1151_v23 = vmul.f32 %v1139_v21, %v975_v18 }
 0x1cb   : > { %v825_v25 = vpop.f32.mrb[8].mxu1 }
 0x1cc   : > { %v1156_v26 = vadd.f32 %v1148_v22, %v1060_v3  ;;  %v1159_v27 = vadd.f32 %v1151_v23, %v1063_v5  ;;  %v974_v28 = vmul.f32 0.020408163, %v825_v25  ;;  %v1356_v29 = vpop.f32.mrb[9].mxu1 }
 0x1ce   : > { %1164 = vst.msk [vmem:[%s1521_s12 + $0x18] sm:$0xff] %vm276_vm0, %v1156_v26  ;;  %1167 = vst.msk [vmem:[%s1521_s12 + $0x30] sm:$0xff] %vm276_vm0, %v1159_v27  ;;  %v1150_v4 = vmul.f32 %v1135_v24, %v974_v28 }
 0x1cf   : > { %v965_v7 = vpop.f32.mrb[10].mxu1 }
 0x1d0   : > { %v1158_v31 = vadd.f32 %v1150_v4, %v1062_v30  ;;  %v976_v32 = vmul.f32 0.020408163, %v965_v7  ;;  %v1366_v33 = vpop.f32.mrb[11].mxu1 }
 0x1d2   : > { %1166 = vst.msk [vmem:[%s1521_s12 + $0x28] sm:$0xff] %vm276_vm0, %v1158_v31  ;;  %v1152_v36 = vmul.f32 %v1143_v34, %v976_v32 }
 0x1d4   : > { %v1160_v37 = vadd.f32 %v1152_v36, %v1064_v35 }
 0x1d6   : > { %1168 = vst.msk [vmem:[%s1521_s12 + $0x38] sm:$0xff] %vm276_vm0, %v1160_v37 }
 0x1d7 PF: > { %s15_s18 = sadd.s32 1, %s1386_s18  }
 0x1d8   : > { %p12_p4 = scmp.ge.s32.totalorder %s15_s18, 6  }
 0x1da   :  { %14 = sbr.rel (!%p12_p4) target bundleno = 1 (0x1), region = 76 }

</bundles_post_ra>
